<compile_context>
chip_gen: v7x
topology: tpu7x:2x2x1
jax: 0.10.0
libtpu: 0.0.40
codegen_flags: <defaults>
</compile_context>

<pallas_src>
import functools

import jax
import jax.numpy as jnp
from jax.experimental import pallas as pl
from jax.experimental.pallas import tpu as pltpu

COMPUTE_DTYPE = jnp.bfloat16   # MXU input dtype; accumulation/affine math in f32.


# ----------------------------------------------------------------------------
# Fused conv + folded-BN (+residual, +ReLU) Pallas kernel, lane-dense layout
# ----------------------------------------------------------------------------
def _conv_bn_kernel(*refs, H, W, KH, KW, ph, pw, relu_out, has_res, use_buf):
    """One batch element of  conv(KHxKW, 'same') -> *scale+bias [-> +res] [-> relu].

    Activations are (C, HW) with HW on lanes.  Padding only ever exists in a
    flat VMEM scratch of length (KH-1)*W + (KW-1) + HW: tap (i, j) reads the
    contiguous window scratch[:, i*W + j : i*W + j + HW]; contributions whose
    source column falls outside the image (row wrap-around) are masked to zero
    on the bf16 lhs before the single fused matmul.
    """
    x_ref, w_ref, s_ref, b_ref = refs[:4]
    idx = 4
    r_ref = refs[idx] if has_res else None
    idx += int(has_res)
    o_ref = refs[idx]
    idx += 1
    buf_ref = refs[idx] if use_buf else None

    f32 = jnp.float32
    HW = H * W
    C = x_ref.shape[1]
    before = ph * W + pw                        # flat pad ahead of pixel (0, 0)
    after = (KH - 1 - ph) * W + (KW - 1 - pw)   # flat pad after pixel (H-1, W-1)

    if not use_buf:
        lhs = x_ref[0]                          # 1x1 conv: (C, HW) used directly
    else:
        # Zero only the two padding stripes; the interior is overwritten below,
        # so no full-buffer memset is needed.
        if before > 0:
            buf_ref[:, pl.ds(0, before)] = jnp.zeros((C, before), buf_ref.dtype)
        if after > 0:
            buf_ref[:, pl.ds(before + HW, after)] = jnp.zeros((C, after),
                                                              buf_ref.dtype)
        buf_ref[:, pl.ds(before, HW)] = x_ref[0]          # bf16 copy, no casts

        # Column-wrap masks, hoisted out of the tap loop: one per distinct
        # horizontal offset dj (a flat read that crosses a row boundary would
        # alias the neighbouring image row and must be zeroed).
        colmask = {}
        if KW > 1:
            col = jax.lax.broadcasted_iota(jnp.int32, (C, HW), 1) % W
            for j in range(KW):
                dj = j - pw
                if dj != 0 and dj not in colmask:
                    colmask[dj] = (col + dj >= 0) & (col + dj < W)
        zeros = jnp.zeros((C, HW), buf_ref.dtype)

        # Gather all KH*KW shifted tap windows, stack them on the sublane axis
        # and contract in ONE MXU matmul with K = KH*KW*C.
        taps = []
        for i in range(KH):
            for j in range(KW):
                t = buf_ref[:, pl.ds(i * W + j, HW)]
                dj = j - pw
                if dj != 0:
                    t = jnp.where(colmask[dj], t, zeros)
                taps.append(t)
        lhs = jnp.concatenate(taps, axis=0) if len(taps) > 1 else taps[0]

    acc = jnp.dot(w_ref[...], lhs, preferred_element_type=f32)      # (N, HW) f32
    y = acc * s_ref[...] + b_ref[...]                               # folded BN
    if has_res:
        y = y + r_ref[0].astype(f32)
    if relu_out:
        y = jnp.maximum(y, 0.0)
    o_ref[0] = y.astype(o_ref.dtype)


def conv_bn(x, p, kh, kw, ph, pw, *, relu_out, residual=None, out_dtype=None):
    """Fused Conv(kh x kw, stride 1, 'same') + BN affine [+ residual] [+ ReLU].

    x: (B, C, H, W) NCHW.  p: {"w": (kh*kw, Cin, Cout) f32,
    "scale"/"bias": (Cout, 1) f32}.  residual: (B, Cout, H, W), added (then
    ReLU'd with relu_out) after the affine.
    """
    B, C, H, W = x.shape
    HW = H * W
    T = kh * kw
    N = p["w"].shape[-1]
    out_dtype = COMPUTE_DTYPE if out_dtype is None else out_dtype
    use_buf = T > 1
    has_res = residual is not None

    xf = x.reshape(B, C, HW).astype(COMPUTE_DTYPE)
    # (T, C, N) -> (N, T*C): lhs row t*C + c multiplies w[t, c, n].
    w2d = jnp.transpose(p["w"], (2, 0, 1)).reshape(N, T * C).astype(COMPUTE_DTYPE)

    args = [xf, w2d, p["scale"], p["bias"]]
    in_specs = [pl.BlockSpec((1, C, HW), lambda b: (b, 0, 0)),
                pl.BlockSpec((N, T * C), lambda b: (0, 0)),    # weights resident
                pl.BlockSpec((N, 1), lambda b: (0, 0)),        # scale   resident
                pl.BlockSpec((N, 1), lambda b: (0, 0))]        # bias    resident
    if has_res:
        args.append(residual.reshape(B, N, HW).astype(COMPUTE_DTYPE))
        in_specs.append(pl.BlockSpec((1, N, HW), lambda b: (b, 0, 0)))

    scratch_shapes = []
    if use_buf:
        scratch_shapes.append(
            pltpu.VMEM((C, (kh - 1) * W + (kw - 1) + HW), COMPUTE_DTYPE))

    kernel = functools.partial(
        _conv_bn_kernel, H=H, W=W, KH=kh, KW=kw, ph=ph, pw=pw,
        relu_out=relu_out, has_res=has_res, use_buf=use_buf)

    act = jnp.dtype(COMPUTE_DTYPE).itemsize
    bytes_accessed = (B * HW * C * act + T * C * N * act + 2 * N * 4
                      + (B * HW * N * act if has_res else 0)
                      + B * HW * N * jnp.dtype(out_dtype).itemsize)
    cost = pl.CostEstimate(flops=2 * B * HW * C * N * T, transcendentals=0,
                           bytes_accessed=int(bytes_accessed))

    out = pl.pallas_call(
        kernel,
        out_shape=jax.ShapeDtypeStruct((B, N, HW), out_dtype),
        grid_spec=pltpu.PrefetchScalarGridSpec(
            num_scalar_prefetch=0,
            grid=(B,),
            in_specs=in_specs,
            out_specs=pl.BlockSpec((1, N, HW), lambda b: (b, 0, 0)),
            scratch_shapes=scratch_shapes),
        compiler_params=pltpu.CompilerParams(
            dimension_semantics=("parallel",)),
        cost_estimate=cost,
    )(*args)
    return out.reshape(B, N, H, W)


# ----------------------------------------------------------------------------
# Plain-JAX glue: pooled-strip convs, adaptive pooling, bilinear upsampling
# (tiny tensors — left to XLA so they fuse with each other, per perf review)
# ----------------------------------------------------------------------------
def small_conv_bn(x, p, kh, kw, ph, pw):
    """Conv+BN on a tiny pooled strip (NCHW, f32), plain XLA."""
    cin = x.shape[1]
    w = p["w"].reshape(kh, kw, cin, -1)                     # HWIO
    y = jax.lax.conv_general_dilated(
        x.astype(jnp.float32), w, (1, 1), ((ph, ph), (pw, pw)),
        dimension_numbers=("NCHW", "HWIO", "NCHW"),
        precision=jax.lax.Precision.HIGHEST)
    return y * p["scale"][None, :, :, None] + p["bias"][None, :, :, None]


def adaptive_avg_pool(x, oh, ow):
    """PyTorch AdaptiveAvgPool2d semantics (None keeps the dimension), NCHW."""
    B, C, H, W = x.shape
    oh = H if oh is None else oh
    ow = W if ow is None else ow
    xf = x.astype(jnp.float32)
    if H % oh == 0 and W % ow == 0:
        return xf.reshape(B, C, oh, H // oh, ow, W // ow).mean(axis=(3, 5))
    rows = []
    for i in range(oh):
        h0, h1 = (i * H) // oh, -(-((i + 1) * H) // oh)
        cols = []
        for j in range(ow):
            w0, w1 = (j * W) // ow, -(-((j + 1) * W) // ow)
            cols.append(jnp.mean(xf[:, :, h0:h1, w0:w1], axis=(2, 3)))
        rows.append(jnp.stack(cols, axis=-1))
    return jnp.stack(rows, axis=-2)


def bilinear_resize(x, out_h, out_w):
    """Bilinear interpolation with align_corners=True, NCHW, f32 math."""
    B, C, H, W = x.shape
    xf = x.astype(jnp.float32)

    def coords(out, inp):
        if inp == 1 or out == 1:
            src = jnp.zeros((out,), jnp.float32)
        else:
            src = jnp.arange(out, dtype=jnp.float32) * ((inp - 1) / (out - 1))
        i0 = jnp.floor(src).astype(jnp.int32)
        i1 = jnp.minimum(i0 + 1, inp - 1)
        return src - i0.astype(jnp.float32), i0, i1

    fh, h0, h1 = coords(out_h, H)
    fw, w0, w1 = coords(out_w, W)
    x00 = xf[:, :, h0][:, :, :, w0]
    x01 = xf[:, :, h0][:, :, :, w1]
    x10 = xf[:, :, h1][:, :, :, w0]
    x11 = xf[:, :, h1][:, :, :, w1]
    fh = fh[None, None, :, None]
    fw = fw[None, None, None, :]
    top = x00 * (1.0 - fw) + x01 * fw
    bot = x10 * (1.0 - fw) + x11 * fw
    return top * (1.0 - fh) + bot * fh


# ----------------------------------------------------------------------------
# Module forward passes
# ----------------------------------------------------------------------------
def strip_pooling_forward(x, p):
    """x: (B, C, H, W).  Mirrors StripPooling.forward with pool_size=(4, 2)."""
    B, C, H, W = x.shape
    # conv1_1 / conv1_2 share their input -> one packed 1x1 conv (outputs concat).
    x12 = conv_bn(x, p["conv1_12"], 1, 1, 0, 0, relu_out=True)
    ic = x12.shape[1] // 2
    x1, x2 = x12[:, :ic], x12[:, ic:]

    # Main-branch 3x3 at full resolution -> Pallas.
    x2_1 = conv_bn(x1, p["conv2_0"], 3, 3, 1, 1, relu_out=False)

    # Pooled strip branches (4x4 / 2x2 / 1xW / Hx1, C=2) -> plain XLA so they
    # fuse with the pool + resize glue instead of paying a launch each.
    x2_2 = bilinear_resize(small_conv_bn(adaptive_avg_pool(x1, 4, 4),
                                         p["conv2_1"], 3, 3, 1, 1), H, W)
    x2_3 = bilinear_resize(small_conv_bn(adaptive_avg_pool(x1, 2, 2),
                                         p["conv2_2"], 3, 3, 1, 1), H, W)
    x2_4 = bilinear_resize(small_conv_bn(adaptive_avg_pool(x2, 1, None),
                                         p["conv2_3"], 1, 3, 0, 1), H, W)
    x2_5 = bilinear_resize(small_conv_bn(adaptive_avg_pool(x2, None, 1),
                                         p["conv2_4"], 3, 1, 1, 0), H, W)

    # relu(x2_1+x2_2+x2_3) and relu(x2_5+x2_4) feed conv2_5 / conv2_6, packed
    # into ONE block-diagonal 3x3 conv whose output is already the channel
    # concat that conv3 consumes.
    s = jnp.concatenate(
        [jnp.maximum(x2_1.astype(jnp.float32) + x2_2 + x2_3, 0.0),
         jnp.maximum(x2_5 + x2_4, 0.0)], axis=1)
    y12 = conv_bn(s, p["conv2_56"], 3, 3, 1, 1, relu_out=True)

    # conv3 (1x1 + BN) with the residual add + final ReLU fused as its epilogue.
    return conv_bn(y12, p["conv3"], 1, 1, 0, 0, relu_out=True, residual=x)


def sphead_forward(x_nchw, params):
    """SPHead.forward.  Input/output NCHW f32 (PyTorch convention)."""
    x = x_nchw.astype(COMPUTE_DTYPE)      # NCHW kept as-is (lane-dense layout)
    x = conv_bn(x, params["trans"], 1, 1, 0, 0, relu_out=True)
    x = strip_pooling_forward(x, params["sp1"])
    x = strip_pooling_forward(x, params["sp2"])
    x = conv_bn(x, params["score1"], 3, 3, 1, 1, relu_out=True)
    # Dropout2d(0.1) is identity at inference.
    return conv_bn(x, params["score2"], 1, 1, 0, 0, relu_out=False,
                   out_dtype=jnp.float32)   # final 1x1 conv + bias


# ----------------------------------------------------------------------------
# Deterministic parameter construction (synthetic; BN folded into scale/bias)
# ----------------------------------------------------------------------------
def conv_bn_params(key, kh, kw, cin, cout):
    k1, k2, k3, k4, k5 = jax.random.split(key, 5)
    w = 0.1 * jax.random.normal(k1, (kh * kw, cin, cout), jnp.float32)
    gamma = 1.0 + 0.1 * jax.random.normal(k2, (cout,), jnp.float32)
    beta = 0.1 * jax.random.normal(k3, (cout,), jnp.float32)
    mean = 0.1 * jax.random.normal(k4, (cout,), jnp.float32)
    var = 1.0 + 0.1 * jax.random.uniform(k5, (cout,), jnp.float32)
    scale = gamma / jnp.sqrt(var + 1e-5)
    bias = beta - mean * scale
    return {"w": w, "scale": scale[:, None], "bias": bias[:, None]}


def conv_bias_params(key, kh, kw, cin, cout):
    k1, k2 = jax.random.split(key)
    w = 0.1 * jax.random.normal(k1, (kh * kw, cin, cout), jnp.float32)
    b = 0.1 * jax.random.normal(k2, (cout,), jnp.float32)
    return {"w": w, "scale": jnp.ones((cout, 1), jnp.float32), "bias": b[:, None]}


def _pack_outputs(pa, pb):
    """Two convs that share their input -> one conv with concatenated outputs."""
    return {"w": jnp.concatenate([pa["w"], pb["w"]], axis=-1),
            "scale": jnp.concatenate([pa["scale"], pb["scale"]], axis=0),
            "bias": jnp.concatenate([pa["bias"], pb["bias"]], axis=0)}


def _pack_block_diag(pa, pb):
    """Two same-kernel convs on disjoint channel groups -> block-diagonal conv."""
    t, ca, na = pa["w"].shape
    _, cb, nb = pb["w"].shape
    w = jnp.zeros((t, ca + cb, na + nb), jnp.float32)
    w = w.at[:, :ca, :na].set(pa["w"]).at[:, ca:, na:].set(pb["w"])
    return {"w": w,
            "scale": jnp.concatenate([pa["scale"], pb["scale"]], axis=0),
            "bias": jnp.concatenate([pa["bias"], pb["bias"]], axis=0)}


def strip_pooling_params(key, c):
    ic = c // 4
    ks = jax.random.split(key, 10)
    return {
        "conv1_12": _pack_outputs(conv_bn_params(ks[0], 1, 1, c, ic),
                                  conv_bn_params(ks[1], 1, 1, c, ic)),
        "conv2_0": conv_bn_params(ks[2], 3, 3, ic, ic),
        "conv2_1": conv_bn_params(ks[3], 3, 3, ic, ic),
        "conv2_2": conv_bn_params(ks[4], 3, 3, ic, ic),
        "conv2_3": conv_bn_params(ks[5], 1, 3, ic, ic),
        "conv2_4": conv_bn_params(ks[6], 3, 1, ic, ic),
        "conv2_56": _pack_block_diag(conv_bn_params(ks[7], 3, 3, ic, ic),
                                     conv_bn_params(ks[8], 3, 3, ic, ic)),
        "conv3": conv_bn_params(ks[9], 1, 1, 2 * ic, c),
    }


def sphead_params(key, in_channels, out_channels):
    ic = in_channels // 2
    ks = jax.random.split(key, 5)
    return {
        "trans":  conv_bn_params(ks[0], 1, 1, in_channels, ic),
        "sp1":    strip_pooling_params(ks[1], ic),
        "sp2":    strip_pooling_params(ks[2], ic),
        "score1": conv_bn_params(ks[3], 3, 3, ic, ic // 2),
        "score2": conv_bias_params(ks[4], 1, 1, ic // 2, out_channels),
    }


# ----------------------------------------------------------------------------
# Self-check of the conv kernel (tap / padding / wrap-mask logic) vs lax.conv
# ----------------------------------------------------------------------------
def _check_conv_kernel():
    key = jax.random.PRNGKey(42)
    for (h, w, c, n, kh, kw) in [(5, 6, 4, 4, 3, 3), (1, 7, 2, 4, 1, 3),
                                 (6, 1, 4, 4, 3, 1), (4, 4, 2, 2, 3, 3),
                                 (4, 4, 8, 6, 1, 1)]:
        kx, kp, key = jax.random.split(key, 3)
        x = jax.random.normal(kx, (2, c, h, w), jnp.float32)
        p = conv_bn_params(kp, kh, kw, c, n)
        ph, pw = (kh - 1) // 2, (kw - 1) // 2
        got = conv_bn(x, p, kh, kw, ph, pw, relu_out=True, out_dtype=jnp.float32)
        wf = p["w"].astype(COMPUTE_DTYPE).astype(jnp.float32).reshape(kh, kw, c, n)
        ref = jax.lax.conv_general_dilated(
            x.astype(COMPUTE_DTYPE).astype(jnp.float32), wf, (1, 1),
            ((ph, ph), (pw, pw)),
            dimension_numbers=("NCHW", "HWIO", "NCHW"),
            precision=jax.lax.Precision.HIGHEST)
        ref = jnp.maximum(ref * p["scale"][None, :, :, None]
                          + p["bias"][None, :, :, None], 0.0)
        assert jnp.allclose(got, ref, atol=2e-2, rtol=2e-2), (h, w, c, n, kh, kw)


# ----------------------------------------------------------------------------
if __name__ == "__main__":
    _check_conv_kernel()

    key = jax.random.PRNGKey(0)
    kx, kp = jax.random.split(key)

    B, Cin, H, W = 2, 16, 16, 16   # SPHead inter = 8, StripPooling inter = 2
    Cout = 5

    x = jax.random.normal(kx, (B, Cin, H, W), jnp.float32)   # NCHW like PyTorch
    params = sphead_params(kp, Cin, Cout)

    fwd = jax.jit(sphead_forward)
    y = jax.block_until_ready(fwd(x, params))

    assert y.shape == (B, Cout, H, W), y.shape
    assert y.dtype == jnp.float32
    assert bool(jnp.all(jnp.isfinite(y)))
    print("KERNEL_OK")
</pallas_src>

<mosaic_0001>
module attributes {stable_mosaic.version = 11 : i64} {
  func.func @_conv_bn_kernel(%arg0: i32, %arg1: memref<1x4x30xbf16, #tpu.memory_space<vmem>>, %arg2: memref<4x36xbf16, #tpu.memory_space<vmem>>, %arg3: memref<4x1xf32, #tpu.memory_space<vmem>>, %arg4: memref<4x1xf32, #tpu.memory_space<vmem>>, %arg5: memref<1x4x30xf32, #tpu.memory_space<vmem>>, %arg6: memref<4x44xbf16, #tpu.memory_space<vmem>>) attributes {dimension_semantics = [#tpu.dimension_semantics<parallel>], iteration_bounds = array<i64: 2>, scalar_prefetch = 0 : i64, scratch_operands = 1 : i64, tpu.core_type = #tpu.core_type<tc>, window_params = [{transform_indices = @transform_0, window_bounds = array<i64: 1, 4, 30>}, {pipeline_mode = #tpu.pipeline_mode<synchronous>, transform_indices = @transform_1, window_bounds = array<i64: 4, 36>}, {pipeline_mode = #tpu.pipeline_mode<synchronous>, transform_indices = @transform_2, window_bounds = array<i64: 4, 1>}, {pipeline_mode = #tpu.pipeline_mode<synchronous>, transform_indices = @transform_3, window_bounds = array<i64: 4, 1>}, {transform_indices = @transform_4, window_bounds = array<i64: 1, 4, 30>}]} {
    %cst = arith.constant 0.000000e+00 : bf16
    %0 = vector.broadcast %cst : bf16 to vector<4x7xbf16>
    %c0 = arith.constant 0 : index
    %c0_0 = arith.constant 0 : index
    %1 = vector.load %arg6[%c0, %c0_0] : memref<4x44xbf16, #tpu.memory_space<vmem>>, vector<4x7xbf16>
    tpu.vector_store %arg6[%c0, %c0_0], %0 {strides = array<i32>} : memref<4x44xbf16, #tpu.memory_space<vmem>>, vector<4x7xbf16>,
    %cst_1 = arith.constant 0.000000e+00 : bf16
    %2 = vector.broadcast %cst_1 : bf16 to vector<4x7xbf16>
    %c0_2 = arith.constant 0 : index
    %c37 = arith.constant 37 : index
    %3 = vector.load %arg6[%c0_2, %c37] : memref<4x44xbf16, #tpu.memory_space<vmem>>, vector<4x7xbf16>
    tpu.vector_store %arg6[%c0_2, %c37], %2 {strides = array<i32>} : memref<4x44xbf16, #tpu.memory_space<vmem>>, vector<4x7xbf16>,
    %c0_3 = arith.constant 0 : index
    %c0_4 = arith.constant 0 : index
    %c0_5 = arith.constant 0 : index
    %4 = vector.load %arg1[%c0_3, %c0_4, %c0_5] : memref<1x4x30xbf16, #tpu.memory_space<vmem>>, vector<1x4x30xbf16>
    %5 = vector.shape_cast %4 : vector<1x4x30xbf16> to vector<4x30xbf16>
    %c0_6 = arith.constant 0 : index
    %c7 = arith.constant 7 : index
    %6 = vector.load %arg6[%c0_6, %c7] : memref<4x44xbf16, #tpu.memory_space<vmem>>, vector<4x30xbf16>
    tpu.vector_store %arg6[%c0_6, %c7], %5 {strides = array<i32>} : memref<4x44xbf16, #tpu.memory_space<vmem>>, vector<4x30xbf16>,
    %7 = tpu.iota {dimensions = array<i32: 1>} : vector<4x30xi32>
    %c6_i32 = arith.constant 6 : i32
    %c0_i32 = arith.constant 0 : i32
    %8 = arith.cmpi eq, %c6_i32, %c0_i32 : i32
    %c1_i32 = arith.constant 1 : i32
    %9 = arith.select %8, %c1_i32, %c6_i32 : i32
    %10 = vector.broadcast %9 : i32 to vector<4x30xi32>
    %11 = arith.remsi %7, %10 : vector<4x30xi32>
    %c0_i32_7 = arith.constant 0 : i32
    %12 = vector.broadcast %c0_i32_7 : i32 to vector<4x30xi32>
    %13 = arith.cmpi ne, %11, %12 : vector<4x30xi32>
    %c0_i32_8 = arith.constant 0 : i32
    %14 = vector.broadcast %c0_i32_8 : i32 to vector<4x30xi32>
    %15 = arith.cmpi slt, %11, %14 : vector<4x30xi32>
    %c0_i32_9 = arith.constant 0 : i32
    %16 = arith.cmpi slt, %9, %c0_i32_9 : i32
    %17 = vector.broadcast %16 : i1 to vector<4x30xi1>
    %18 = vector.broadcast %17 : vector<4x30xi1> to vector<4x30xi1>
    %19 = arith.xori %15, %18 : vector<4x30xi1>
    %20 = arith.andi %19, %13 : vector<4x30xi1>
    %21 = vector.broadcast %9 : i32 to vector<4x30xi32>
    %22 = arith.addi %11, %21 : vector<4x30xi32>
    %23 = arith.select %20, %22, %11 : vector<4x30xi1>, vector<4x30xi32>
    %c-1_i32 = arith.constant -1 : i32
    %24 = vector.broadcast %c-1_i32 : i32 to vector<4x30xi32>
    %25 = arith.addi %23, %24 : vector<4x30xi32>
    %c0_i32_10 = arith.constant 0 : i32
    %26 = vector.broadcast %c0_i32_10 : i32 to vector<4x30xi32>
    %27 = arith.cmpi sge, %25, %26 : vector<4x30xi32>
    %c-1_i32_11 = arith.constant -1 : i32
    %28 = vector.broadcast %c-1_i32_11 : i32 to vector<4x30xi32>
    %29 = arith.addi %23, %28 : vector<4x30xi32>
    %c6_i32_12 = arith.constant 6 : i32
    %30 = vector.broadcast %c6_i32_12 : i32 to vector<4x30xi32>
    %31 = arith.cmpi slt, %29, %30 : vector<4x30xi32>
    %32 = arith.andi %27, %31 : vector<4x30xi1>
    %c1_i32_13 = arith.constant 1 : i32
    %33 = vector.broadcast %c1_i32_13 : i32 to vector<4x30xi32>
    %34 = arith.addi %23, %33 : vector<4x30xi32>
    %c0_i32_14 = arith.constant 0 : i32
    %35 = vector.broadcast %c0_i32_14 : i32 to vector<4x30xi32>
    %36 = arith.cmpi sge, %34, %35 : vector<4x30xi32>
    %c1_i32_15 = arith.constant 1 : i32
    %37 = vector.broadcast %c1_i32_15 : i32 to vector<4x30xi32>
    %38 = arith.addi %23, %37 : vector<4x30xi32>
    %c6_i32_16 = arith.constant 6 : i32
    %39 = vector.broadcast %c6_i32_16 : i32 to vector<4x30xi32>
    %40 = arith.cmpi slt, %38, %39 : vector<4x30xi32>
    %41 = arith.andi %36, %40 : vector<4x30xi1>
    %cst_17 = arith.constant 0.000000e+00 : bf16
    %42 = vector.broadcast %cst_17 : bf16 to vector<4x30xbf16>
    %c0_18 = arith.constant 0 : index
    %c0_19 = arith.constant 0 : index
    %43 = vector.load %arg6[%c0_18, %c0_19] : memref<4x44xbf16, #tpu.memory_space<vmem>>, vector<4x30xbf16>
    %44 = arith.select %32, %43, %42 : vector<4x30xi1>, vector<4x30xbf16>
    %c0_20 = arith.constant 0 : index
    %c1 = arith.constant 1 : index
    %45 = vector.load %arg6[%c0_20, %c1] : memref<4x44xbf16, #tpu.memory_space<vmem>>, vector<4x30xbf16>
    %c0_21 = arith.constant 0 : index
    %c2 = arith.constant 2 : index
    %46 = vector.load %arg6[%c0_21, %c2] : memref<4x44xbf16, #tpu.memory_space<vmem>>, vector<4x30xbf16>
    %47 = arith.select %41, %46, %42 : vector<4x30xi1>, vector<4x30xbf16>
    %c0_22 = arith.constant 0 : index
    %c6 = arith.constant 6 : index
    %48 = vector.load %arg6[%c0_22, %c6] : memref<4x44xbf16, #tpu.memory_space<vmem>>, vector<4x30xbf16>
    %49 = arith.select %32, %48, %42 : vector<4x30xi1>, vector<4x30xbf16>
    %c0_23 = arith.constant 0 : index
    %c7_24 = arith.constant 7 : index
    %50 = vector.load %arg6[%c0_23, %c7_24] : memref<4x44xbf16, #tpu.memory_space<vmem>>, vector<4x30xbf16>
    %c0_25 = arith.constant 0 : index
    %c8 = arith.constant 8 : index
    %51 = vector.load %arg6[%c0_25, %c8] : memref<4x44xbf16, #tpu.memory_space<vmem>>, vector<4x30xbf16>
    %52 = arith.select %41, %51, %42 : vector<4x30xi1>, vector<4x30xbf16>
    %c0_26 = arith.constant 0 : index
    %c12 = arith.constant 12 : index
    %53 = vector.load %arg6[%c0_26, %c12] : memref<4x44xbf16, #tpu.memory_space<vmem>>, vector<4x30xbf16>
    %54 = arith.select %32, %53, %42 : vector<4x30xi1>, vector<4x30xbf16>
    %c0_27 = arith.constant 0 : index
    %c13 = arith.constant 13 : index
    %55 = vector.load %arg6[%c0_27, %c13] : memref<4x44xbf16, #tpu.memory_space<vmem>>, vector<4x30xbf16>
    %c0_28 = arith.constant 0 : index
    %c14 = arith.constant 14 : index
    %56 = vector.load %arg6[%c0_28, %c14] : memref<4x44xbf16, #tpu.memory_space<vmem>>, vector<4x30xbf16>
    %57 = arith.select %41, %56, %42 : vector<4x30xi1>, vector<4x30xbf16>
    %58 = tpu.concatenate %44, %45, %47, %49, %50, %52, %54, %55, %57 in 0 : vector<4x30xbf16>, vector<4x30xbf16>, vector<4x30xbf16>, vector<4x30xbf16>, vector<4x30xbf16>, vector<4x30xbf16>, vector<4x30xbf16>, vector<4x30xbf16>, vector<4x30xbf16> -> vector<36x30xbf16>
    %c0_29 = arith.constant 0 : index
    %c0_30 = arith.constant 0 : index
    %59 = vector.load %arg2[%c0_29, %c0_30] : memref<4x36xbf16, #tpu.memory_space<vmem>>, vector<4x36xbf16>
    %cst_31 = arith.constant dense<0.000000e+00> : vector<4x30xf32>
    %60 = tpu.matmul %59, %58, %cst_31 {dimension_numbers = #tpu.dot_dimension_numbers<[1], [0], [0], [1], [0, 0, 1, 1], [], []>} : vector<4x36xbf16>, vector<36x30xbf16>, vector<4x30xf32> -> vector<4x30xf32>
    %c0_32 = arith.constant 0 : index
    %c0_33 = arith.constant 0 : index
    %61 = vector.load %arg3[%c0_32, %c0_33] : memref<4x1xf32, #tpu.memory_space<vmem>>, vector<4x1xf32>
    %62 = vector.broadcast %61 : vector<4x1xf32> to vector<4x30xf32>
    %63 = arith.mulf %60, %62 : vector<4x30xf32>
    %c0_34 = arith.constant 0 : index
    %c0_35 = arith.constant 0 : index
    %64 = vector.load %arg4[%c0_34, %c0_35] : memref<4x1xf32, #tpu.memory_space<vmem>>, vector<4x1xf32>
    %65 = vector.broadcast %64 : vector<4x1xf32> to vector<4x30xf32>
    %66 = arith.addf %63, %65 : vector<4x30xf32>
    %cst_36 = arith.constant 0.000000e+00 : f32
    %67 = vector.broadcast %cst_36 : f32 to vector<4x30xf32>
    %68 = arith.maximumf %66, %67 : vector<4x30xf32>
    %c0_37 = arith.constant 0 : index
    %c0_38 = arith.constant 0 : index
    %c0_39 = arith.constant 0 : index
    %69 = vector.load %arg5[%c0_37, %c0_38, %c0_39] : memref<1x4x30xf32, #tpu.memory_space<vmem>>, vector<1x4x30xf32>
    %70 = vector.shape_cast %69 : vector<1x4x30xf32> to vector<4x30xf32>
    %71 = vector.shape_cast %68 : vector<4x30xf32> to vector<1x4x30xf32>
    tpu.vector_store %arg5[%c0_37, %c0_38, %c0_39], %71 {strides = array<i32>} : memref<1x4x30xf32, #tpu.memory_space<vmem>>, vector<1x4x30xf32>,
    return
  }
  func.func @transform_0(%arg0: i32) -> (i32, i32, i32) {
    %c0_i32 = arith.constant 0 : i32
    %c0_i32_0 = arith.constant 0 : i32
    %c0_i32_1 = arith.constant 0 : i32
    return %arg0, %c0_i32, %c0_i32_0 : i32, i32, i32
  }
  func.func @transform_1(%arg0: i32) -> (i32, i32) {
    %c0_i32 = arith.constant 0 : i32
    %c0_i32_0 = arith.constant 0 : i32
    %c0_i32_1 = arith.constant 0 : i32
    return %c0_i32, %c0_i32_0 : i32, i32
  }
  func.func @transform_2(%arg0: i32) -> (i32, i32) {
    %c0_i32 = arith.constant 0 : i32
    %c0_i32_0 = arith.constant 0 : i32
    %c0_i32_1 = arith.constant 0 : i32
    return %c0_i32, %c0_i32_0 : i32, i32
  }
  func.func @transform_3(%arg0: i32) -> (i32, i32) {
    %c0_i32 = arith.constant 0 : i32
    %c0_i32_0 = arith.constant 0 : i32
    %c0_i32_1 = arith.constant 0 : i32
    return %c0_i32, %c0_i32_0 : i32, i32
  }
  func.func @transform_4(%arg0: i32) -> (i32, i32, i32) {
    %c0_i32 = arith.constant 0 : i32
    %c0_i32_0 = arith.constant 0 : i32
    %c0_i32_1 = arith.constant 0 : i32
    return %arg0, %c0_i32, %c0_i32_0 : i32, i32, i32
  }
}

</mosaic_0001>

<bundles_post_ra>
// kernel: tpu_custom_call.1
= control target key start
LH: loop header
LB: loop body
LE: loop exit
PB: predicated region body
PF: predicated region fallthrough
CT: control target
= control target key end

     0   :  { %9 = vsyncpa [#allocation4], 0  ;;  %s828_s0 = inlined_call_operand.vmem [shape: bf16[2,4,30], index: 0, kind: input, shape index: {}]   ;;  %s829_s1 = inlined_call_operand.vmem [shape: bf16[4,36], index: 1, kind: input, shape index: {}]   ;;  %s830_s2 = inlined_call_operand.vmem [shape: f32[4,1], index: 2, kind: input, shape index: {}]   ;;  %s831_s3 = inlined_call_operand.vmem [shape: f32[4,1], index: 3, kind: input, shape index: {}]   ;;  %s832_s4 = inlined_call_operand.hbm [shape: f32[2,4,30], index: 4, kind: output, shape index: {}]  }
   0x1   :  { %11 = vsyncpa [#allocation4 + $0x1], 0  ;;  %s693_s15 = smov 0   ;;  %s695_s16 = smov 0  }
   0x2   :  { %s697_s17 = smov 0   ;;  %s699_s18 = smov 0  }
   0x3 LB: > { %s714_s19 = sadd.s32 4294967295, %s647_s18   ;;  %s498_s20 = sadd.s32 4294967294, %s647_s18   ;;  %s647_s18 = sphi %s699_s18, %s840_s18   ;;  %s643_s17 = sphi %s697_s17, %s839_s17   ;;  %s639_s16 = sphi %s695_s16, %s838_s16   ;;  %s635_s15 = sphi %s693_s15, %s837_s15  }
   0x4   : > { %s718_s21 = sadd.s32 1, %s647_s18   ;;  %s113_s22 = sadd.s32 1, %s643_s17 }
   0x5   : > { %s110_s23 = ssub.s32 %s647_s18, %s718_s21  ;;  %p123_p0 = scmp.ne.s32.totalorder %s643_s17, %s639_s16 }
   0x6   : > { %p111_p1 = scmp.eq.s32.totalorder %s110_s23, 0  ;;  %p124_p2 = scmp.eq.s32.totalorder %s714_s19, 1 }
   0x7   : > { %p129_p3 = scmp.ne.s32.totalorder %s639_s16, %s635_s15  ;;  %p130_p4 = scmp.eq.s32.totalorder %s498_s20, 1 }
   0x8   : > { %s729_s24 = scalar_select %p111_p1, %s643_s17, %s113_s22  }
   0x9   : > { %p731_p5 = por %p124_p2, %p123_p0  ;;  %p735_p6 = por %p130_p4, %p129_p3 }
   0xa   : > { %p501_p7 = scmp.ge.s32.totalorder %s647_s18, 1  ;;  %p164_p8 = scmp.lt.s32.totalorder %s647_s18, 3 }
   0xc   : > { %p165_p9 = pnand %p501_p7, %p164_p8 }
   0xd   : > { %p189_p10 = scmp.lt.s32.totalorder (!%p165_p9), %s714_s19, 1  ;;  %v207_v0 = vlaneseq (!%p165_p9)  ;;  %vm196_vm0 = vcmask (!%p165_p9), 50176   ;;  %v649_v1 = vmov (!%p165_p9), 0   ;;  %vm198_vm1 = vcmask (!%p165_p9), 353576   ;;  %s650_s6 = smov (!%p165_p9), 7  }
   0xe   : > { %168 = sbr.rel (%p165_p9) target bundleno = 525 (0x20d), region = 36  ;;  %197 = vst.msk [vmem:[#allocation2] sm:$0x3] (!%p165_p9), %vm196_vm0, %v649_v1  ;;  %582 = vset.pattern.permute.xlu0 (!%p165_p9), %v649_v1  ;;  %583 = vset.pattern.permute.xlu1 (!%p165_p9), %v649_v1  ;;  %s651_s7 = smov (!%p165_p9), 2   ;;  %vm205_vm13 = vcmask (!%p165_p9), 295992   ;;  %v659_v35 = vmov (!%p165_p9), 0.0  }
   0xf   : > { %v208_v2 = vand.u32 (!%p165_p9), 127, %v207_v0  ;;  %199 = vst.msk [vmem:[#allocation2] sm:$0x3] (!%p165_p9), %vm198_vm1, %v649_v1  ;;  %s652_s8 = smov (!%p165_p9), 6   ;;  %s653_s9 = smov (!%p165_p9), 8   ;;  %v269_v24 = vshrl.u32 (!%p165_p9), %v207_v0, 7  ;;  %513 = vmatprep.subr.bf16.mxu0 (!%p165_p9), %v659_v35 }
  0x10   : > { %s654_s10 = smov (!%p165_p9), 12   ;;  %s655_s11 = smov (!%p165_p9), 14   ;;  %v656_v20 = vmov (!%p165_p9), 1983009808   ;;  %v415_v52 = vld [vmem:[%s831_s3] sm:$0xf] (!%p165_p9) }
  0x11   : > { %v743_v3 = vmul.u32.u64.low (!%p165_p9), 2863311531, %v208_v2  ;;  %v744_v4 = vmul.u32.u64.high 2863311531, %v208_v2, %v743_v3  ;;  %v266_v21 = vunpack.c.l.s4 (!%p165_p9), %v656_v20  ;;  %s657_s12 = smov (!%p165_p9), 121   ;;  %s658_s13 = smov (!%p165_p9), 127   ;;  %v408_v53 = vld [vmem:[%s830_s2] sm:$0xf] (!%p165_p9) }
  0x12   : > { %s660_s14 = smov (!%p165_p9), 126   ;;  %s661_s20 = smov (!%p165_p9), 120  }
  0x13   : > { %v215_v6 = vshrl.u32 (!%p165_p9), %v744_v4, 2  ;;  %v267_v23 = vunpack.c.0.s8 (!%p165_p9), %v266_v21  ;;  %s662_s22 = smov (!%p165_p9), 116   ;;  %s664_s23 = smov (!%p165_p9), 122  }
  0x14   : > { %s666_s30 = smov (!%p165_p9), 115  }
  0x15   : > { %s190_s27 = scalar_select %p189_p10, %s714_s19, 1  ;;  %v216_v7 = vmul.u32 6, %v215_v6  ;;  %v270_v25 = vsub.s32 %v267_v23, %v269_v24  ;;  %v360_v6 = vld [vmem:[%s829_s1] sm:$0x3] }
  0x17   : > { %s503_s28 = sshll.u32 %s190_s27, 1  ;;  %v217_v8 = vsub.s32 %v208_v2, %v216_v7  ;;  %s665_s27 = smov 114  }
  0x18   : > { %s192_s5 = scalar_lea.vmem %s828_s0, %s503_s28 }
  0x19   : > { %v200_v5 = vld [vmem:[%s192_s5] sm:$0x3]  ;;  %vm220_vm2 = vcmp.ne.s32.totalorder %v217_v8, 0  ;;  %vm221_vm3 = vcmp.lt.s32.totalorder %v217_v8, 0  ;;  %v223_v9 = vadd.s32 6, %v217_v8 }
  0x1a   : > { %202 = vrot.lane.b32.xlu0 %v200_v5, %s650_s6  ;;  %vm222_vm4 = vmand %vm221_vm3, %vm220_vm2  ;;  %vm663_vm3 = vmmov 0  }
  0x1b   : > { %v224_v10 = vsel %vm222_vm4, %v223_v9, %v217_v8  ;;  %519 = vmatprep.mubr.msk.bf16.mxu0 %vm663_vm3, %v659_v35  ;;  %vm341_vm4 = vcmask 1041408  }
  0x1c   : > { %v229_v11 = vadd.s32 1, %v224_v10  ;;  %v225_v12 = vadd.s32 4294967295, %v224_v10 }
  0x1e   : > { %vm230_vm5 = vcmp.ge.s32.totalorder %v229_v11, 0  ;;  %vm231_vm6 = vcmp.lt.s32.totalorder %v229_v11, 6  ;;  %vm226_vm7 = vcmp.ge.s32.totalorder %v225_v12, 0  ;;  %vm227_vm8 = vcmp.lt.s32.totalorder %v225_v12, 6 }
  0x1f   : > { %vm232_vm9 = vmand %vm230_vm5, %vm231_vm6  ;;  %vm345_vm5 = vcmask 1043456   ;;  %vm348_vm6 = vcmask 1045504  }
  0x20   : > { %v238_v13 = vsel %vm232_vm9, 1, %v649_v1  ;;  %vm228_vm10 = vmand %vm226_vm7, %vm227_vm8  ;;  %vm361_vm7 = vcmask 293888   ;;  %vm423_vm8 = vcmask 240640  }
  0x21   : > { %v239_v14 = vpack.c.b16 %v238_v13, %v238_v13  ;;  %v234_v15 = vsel %vm228_vm10, 1, %v649_v1 }
  0x22   : > { %v235_v16 = vpack.c.b16 %v234_v15, %v234_v15 }
  0x23   : > { %vm240_vm11 = vcmp.ne.s16.totalorder %v239_v14, 0 }
  0x24   : > { %v241_v17 = vsel %vm240_vm11, 65537, %v649_v1  ;;  %vm750_vm12 = vcmp.ne.s16.totalorder %v235_v16, 0 }
  0x25   : > { %242 = vrot.lane.b32.xlu1 %v241_v17, %s651_s7  ;;  %v246_v19 = vsel %vm750_vm12, 65537, %v649_v1 }
  0x26   : > { %247 = vrot.lane.b32.xlu0 %v246_v19, %s652_s8 }
  0x29   : > { %251 = vrot.lane.b32.xlu1 %v241_v17, %s653_s9  ;;  %s186_s9 = sand.u32 1, %s639_s16  }
  0x2a   : > { %255 = vrot.lane.b32.xlu0 %v246_v19, %s654_s10  ;;  %s502_s10 = sshll.u32 %s186_s9, 2 }
  0x2d   : > { %259 = vrot.lane.b32.xlu1 %v241_v17, %s655_s11  ;;  %s506_s11 = sshll.u32 %s714_s19, 6  ;;  %s667_s19 = smov [#allocation3]  }
  0x2e   : > { %s589_s28 = sshll.u32 %s667_s19, 4  ;;  %s590_s28 = int_to_ptr.vmem [resolvable:$false] %s589_s28 }
  0x2f   : > { %s591_s29 = scalar_lea.vmem %s590_s28, 128 }
  0x8c   : > { %v203_v22 = vpop.permute.xlu0 %202 }
  0x8d   : > { %206 = vst.msk [vmem:[#allocation2] sm:$0x3] %vm205_vm13, %v203_v22 }
  0x94   : > { %v756_v26 = vld [vmem:[#allocation2] sm:$0x3] }
  0x95   : > { %v264_v27 = vcombine.low %v756_v26, %v756_v26  ;;  %v278_v28 = vrot.slane %v756_v26, %v270_v25  ;;  %v237_v58 = vsel %vm750_vm12, %v756_v26, 0 }
  0x97   : > { %v271_v29 = vrot.slane %v264_v27, %v270_v25  ;;  %304 = vrot.lane.b32.xlu1 %v278_v28, %s657_s12  ;;  %v243_v30 = vpop.permute.xlu1 %242  ;;  %s188_s12 = scalar_lea.vmem [#allocation3], %s502_s10 }
  0x98   : > { %vm244_vm14 = vcmp.ne.s16.totalorder %v243_v30, 0  ;;  %v248_v31 = vpop.permute.xlu0 %247 }
  0x99   : > { %279 = vrot.lane.b32.xlu0 %v271_v29, %s658_s13  ;;  %v245_v32 = vsel %vm244_vm14, %v756_v26, 0  ;;  %vm249_vm15 = vcmp.ne.s16.totalorder %v248_v31, 0  ;;  %v328_v51 = vcombine.low %v271_v29, %v271_v29  ;;  %s439_s13 = sshll.u32 %s188_s12, 4  ;;  %s788_s13 = int_to_ptr.vmem [resolvable:$true] %s439_s13 }
  0x9a   : > { %v288_v33 = vrot.slane %v245_v32, %v270_v25  ;;  %v250_v34 = vsel %vm249_vm15, %v756_v26, 0  ;;  %p592_p0 = scmp.lt.s32.totalorder %s788_s13, %s590_s28 }
  0x9b   : > { %v252_v36 = vpop.permute.xlu1 %251  ;;  %v293_v38 = vcombine.low %v250_v34, %v250_v34 }
  0x9c   : > { %v289_v37 = vcombine.low %v288_v33, %v288_v33  ;;  %vm253_vm0 = vcmp.ne.s16.totalorder %v252_v36, 0  ;;  %v256_v39 = vpop.permute.xlu0 %255 }
  0x9d   : > { %v254_v40 = vsel %vm253_vm0, %v756_v26, 0  ;;  %vm257_vm1 = vcmp.ne.s16.totalorder %v256_v39, 0  ;;  %v300_v45 = vrot.slane %v293_v38, %v270_v25 }
  0x9e   : > { %v307_v41 = vcombine.low %v254_v40, %v254_v40  ;;  %v258_v42 = vsel %vm257_vm1, %v756_v26, 0  ;;  %290 = vrot.lane.b32.xlu1 %v289_v37, %s660_s14 }
  0x9f   : > { %v324_v43 = vrot.slane %v258_v42, %v270_v25  ;;  %v260_v44 = vpop.permute.xlu1 %259  ;;  %v301_v49 = vcombine.low %v300_v45, %v300_v45 }
  0xa0   : > { %v314_v46 = vrot.slane %v307_v41, %v270_v25  ;;  %vm261_vm2 = vcmp.ne.s16.totalorder %v260_v44, 0 }
  0xa1   : > { %v325_v47 = vcombine.low %v324_v43, %v324_v43  ;;  %v262_v48 = vsel %vm261_vm2, %v756_v26, 0 }
  0xa2   : > { %315 = vrot.lane.b32.xlu0 %v314_v46, %s661_s20  ;;  %v338_v50 = vrot.slane %v262_v48, %v270_v25 }
  0xa3   : > { %326 = vrot.lane.b32.xlu1 %v325_v47, %s662_s22  ;;  %s786_s22 = scalar_lea.hbm %s832_s4, %s506_s11 }
  0xa6   : > { %302 = vrot.lane.b32.xlu0 %v301_v49, %s664_s23  ;;  %s426_s23 = scalar_lea.sflag [#allocation4], %s186_s9 }
  0xa7   : > { %339 = vrot.lane.b32.xlu1 %v338_v50, %s665_s27  ;;  %s585_s27 = scalar_lea.vmem %s788_s13, 64 }
  0xa8   : > { %p586_p11 = scmp.ne.s32.totalorder %s788_s13, %s585_s27  ;;  %p593_p1 = scmp.lt.s32.totalorder %s591_s29, %s585_s27 }
  0xaa   : > { %329 = vrot.lane.b32.xlu0 %v328_v51, %s666_s30  ;;  %p587_p12 = pnand %p586_p11, %p731_p5  ;;  %p594_p2 = por %p593_p1, %p592_p0 }
  0xab   : > { %418 = vperm.xlu1 %583, %v415_v52  }
  0xac   : > { %p588_p13 = pneg %p587_p12 }
  0xae   : > { %411 = vperm.xlu0 %582, %v408_v53   ;;  %p595_p3 = pnand %p594_p2, %p588_p13 }
 0x109   : > { %v305_v54 = vpop.permute.xlu1 %304 }
 0x10b   : > { %v280_v55 = vpop.permute.xlu0 %279 }
 0x10c   : > { %v344_v59 = vsel %vm341_vm4, %v237_v58, %v280_v55 }
 0x110   : > { %v291_v56 = vpop.permute.xlu1 %290 }
 0x111   : > { %v347_v60 = vsel %vm345_vm5, %v344_v59, %v291_v56 }
 0x114   : > { %v316_v57 = vpop.permute.xlu0 %315 }
 0x115   : > { %v327_v61 = vpop.permute.xlu1 %326  ;;  %v354_v63 = vsel %vm341_vm4, %v305_v54, %v316_v57 }
 0x116   : > { %v356_v2 = vsel %vm345_vm5, %v354_v63, %v327_v61 }
 0x118   : > { %v303_v62 = vpop.permute.xlu0 %302 }
 0x119   : > { %v350_v0 = vsel %vm348_vm6, %v347_v60, %v303_v62  ;;  %v340_v4 = vpop.permute.xlu1 %339 }
 0x11a   : > { %514 = vmatpush3.bf16.msra.mxu0 %v350_v0  ;;  %v366_v5 = vsel %vm341_vm4, %v340_v4, 0 }
 0x11b   : > { %515 = vmatprep.subr.bf16.mxu0 %v659_v35 }
 0x11c   : > { %v330_v1 = vpop.permute.xlu0 %329 }
 0x11d   : > { %v358_v3 = vsel %vm348_vm6, %v356_v2, %v330_v1 }
 0x11e   : > { %516 = vmatpush3.bf16.msra.mxu0 %v358_v3 }
 0x11f   : > { %517 = vmatprep.subr.bf16.mxu0 %v659_v35 }
 0x122   : > { %518 = vmatpush3.bf16.msra.mxu0 %v366_v5 }
 0x125   : > { %520 = vmatmul.mubr.msk.bf16.vlgmr.msra.gmra.mrb[0].mxu0 %vm361_vm7, %v360_v6 }
 0x12a   : > { %v419_v9 = vpop.permute.xlu1 %418 }
 0x12d   : > { %v412_v7 = vpop.permute.xlu0 %411 }
 0x1f8   : > { %v402_v8 = vpop.f32.mrb[0].mxu0 }
 0x1f9   : > { %v414_v10 = vmul.f32 %v412_v7, %v402_v8  ;;  %v521_v11 = vpop.f32.mrb[1].mxu0 }
 0x1fa   : > { %v405_v12 = vpop.f32.mrb[2].mxu0 }
 0x1fb   : > { %v421_v13 = vadd.f32 %v419_v9, %v414_v10  ;;  %v522_v14 = vpop.f32.mrb[3].mxu0 }
 0x1fd   : > { %v422_v15 = vmax.f32 %v421_v13, 0.0 }
 0x1ff   : > { %424 = vst.msk [vmem:[%s188_s12] sm:$0xf] %vm423_vm8, %v422_v15 }
 0x200   : > { %598 = shalt.err (!%p595_p3)
}
 0x201   : > { %s599_s30 = scalar_lea.hbm %s786_s22, 64  ;;  %s603_s7 = scalar_lea.hbm %s832_s4, 128 }
 0x202   : > { %p600_p4 = scmp.ne.s32.totalorder %s786_s22, %s599_s30  ;;  %p604_p9 = scmp.lt.u32.totalorder %s786_s22, %s832_s4 }
 0x203   : > { %p605_p10 = scmp.lt.u32.totalorder %s603_s7, %s599_s30  ;;  %p607_p12 = scmp.lt.u32.totalorder %s599_s30, %s786_s22 }
 0x204   : > { %p601_p7 = pnand %p600_p4, %p731_p5 }
 0x205   : > { %p606_p11 = por %p605_p10, %p604_p9 }
 0x206   : > { %p602_p8 = pneg %p601_p7 }
 0x207   : > { %p608_p13 = por %p607_p12, %p606_p11 }
 0x209   : > { %p609_p0 = pnand %p608_p13, %p602_p8 }
 0x20b   : > { %612 = shalt.err (!%p609_p0)
}
 0x20c   : > { %525 = dma.vmem_to_hbm [thread:$0]  (%p731_p5), %s788_s13, 64, %s786_s22, %s426_s23  }
 0x20d PF: > { %p531_p1 = scmp.ge.s32.totalorder %s647_s18, 2  ;;  %s451_s10 = sand.u32 1, %s635_s15  }
 0x20e   : > { %s452_s11 = scalar_lea.sflag [#allocation4], %s451_s10 }
 0x20f   : > { %p528_p2 = pnand %p531_p1, %p735_p6 }
 0x211   : > { %630 = dma.done.wait (!%p528_p2), %s452_s11, 64  }
 0x212   : > { %632 = vsyncadd (!%p528_p2), %s452_s11, 4294967232  ;;  %p14_p3 = scmp.ge.s32.totalorder %s718_s21, 4   ;;  %s837_s15 = smov %s639_s16 }
 0x213   : > { %s838_s16 = smov %s643_s17  ;;  %s839_s17 = smov %s729_s24 }
 0x214   : > { %s840_s18 = smov %s718_s21  ;;  %16 = sbr.rel (!%p14_p3) target bundleno = 3 (0x3), region = 71 }
 0x21b   :  { %457 = vsyncpa [#allocation4], 1 }
 0x21c   :  { %459 = vsyncpa [#allocation4 + $0x1], 1 }

</bundles_post_ra>
